<compile_context>
chip_gen: v7x
topology: tpu7x:2x2x1
jax: 0.10.0
libtpu: 0.0.40
codegen_flags: <defaults>
</compile_context>

<pallas_src>
import functools

import jax
import jax.numpy as jnp
from jax.experimental import pallas as pl
from jax.experimental.pallas import tpu as pltpu


def _add_kernel(x_ref, y_ref, o_ref):
    # Whole-tile elementwise add on the VPU.
    o_ref[...] = x_ref[...] + y_ref[...]


_LANES = 128


@functools.lru_cache(maxsize=None)
def _generation_params():
    """Per-TPU-generation (block_bytes_per_buffer, vmem_limit_bytes)."""
    kind = ""
    try:
        kind = jax.devices()[0].device_kind.lower()
    except Exception:  # defensive: fall back to generic defaults
        pass
    vmem_cap = None
    try:
        vmem_cap = int(pltpu.get_tpu_info().vmem_capacity_bytes)
    except Exception:
        pass

    is_v5e = ("v5 lite" in kind) or ("v5lite" in kind) or ("v5e" in kind)
    is_v7 = ("v7" in kind) or (vmem_cap is not None and vmem_cap <= (64 << 20))

    if is_v5e:
        # ~0.8 TB/s HBM: a 2 MiB block is already ~2.5 us of DMA, so the
        # ~0.35 us step overhead is mostly hidden.  12 MiB of pipeline buffers
        # fits even the 16 MiB default scoped limit; request 32 MiB for
        # headroom (physical VMEM is 128 MiB).
        return (2 << 20), (32 << 20)
    if is_v7:
        # ~3.2 TB/s HBM: per-step overhead is proportionally largest -> use
        # the biggest blocks, but physical VMEM is only 64 MiB, so cap the
        # scoped request well under it (24 MiB of pipeline buffers / 40 MiB).
        return (4 << 20), (40 << 20)
    # v6e-class (or unknown 128 MiB-VMEM chip): 4 MiB / buffer -> 24 MiB of
    # double-buffered pipeline (~50% of the 48 MiB scoped request).
    return (4 << 20), (48 << 20)


def _block_rows_for(dtype, block_bytes: int) -> int:
    itemsize = jnp.dtype(dtype).itemsize
    # Native sublane packing: 8 rows for 4-byte, 16 for 2-byte, 32 for 1-byte.
    sublanes = max(8, 32 // itemsize)
    rows = block_bytes // (_LANES * itemsize)
    return max(sublanes, (rows // sublanes) * sublanes)


@functools.partial(jax.jit, static_argnames=("donate_x",))
def multi_add(x: jax.Array, y: jax.Array, *, donate_x: bool = False) -> jax.Array:
    """Pallas implementation of Multi_Add.forward: returns x + y.

    donate_x=True adds input_output_aliases={0: 0}; only use it when the
    caller actually donates x (otherwise XLA inserts a defensive copy).
    """
    assert x.shape == y.shape, "forward uses a same-shape add (no broadcasting)"
    assert x.dtype == y.dtype
    orig_shape = x.shape
    total = x.size

    block_bytes, vmem_limit = _generation_params()
    block_rows = _block_rows_for(x.dtype, block_bytes)
    io_alias = {0: 0} if donate_x else {}

    if total % _LANES == 0:
        # Common case (all NCHW-ish activation sizes): lane-dense (rows, 128)
        # slab.  Reshape of a contiguous array is metadata-only under jit.
        rows = total // _LANES
        x2 = x.reshape(rows, _LANES)
        y2 = y.reshape(rows, _LANES)

        if rows <= block_rows:
            # Small input: single full-array block, no grid / pipeline
            # machinery or per-step overhead.
            out2 = pl.pallas_call(
                _add_kernel,
                out_shape=jax.ShapeDtypeStruct((rows, _LANES), x.dtype),
                input_output_aliases=io_alias,
                compiler_params=pltpu.CompilerParams(
                    vmem_limit_bytes=vmem_limit),
            )(x2, y2)
        else:
            spec = pl.BlockSpec((block_rows, _LANES), lambda i: (i, 0))
            out2 = pl.pallas_call(
                _add_kernel,
                out_shape=jax.ShapeDtypeStruct((rows, _LANES), x.dtype),
                grid=(pl.cdiv(rows, block_rows),),
                in_specs=[spec, spec],
                out_specs=spec,
                input_output_aliases=io_alias,
                compiler_params=pltpu.CompilerParams(
                    # TODO(synk): verify on v7x that "parallel" shards this
                    # row loop across both TensorCores; if not, switch to
                    # pltpu.CORE_PARALLEL / core_map for a ~2x BW win.
                    dimension_semantics=("parallel",),
                    vmem_limit_bytes=vmem_limit,
                ),
            )(x2, y2)
        return out2.reshape(orig_shape)

    # Ragged case (total % 128 != 0, rare for NCHW activations): run the flat
    # 1-D arrays through Pallas directly and let it mask the ragged last
    # block -- no jnp.pad / output-slice HBM copies (old path ~3x traffic).
    xf = x.reshape(-1)
    yf = y.reshape(-1)
    block_elems = block_rows * _LANES

    if total <= block_elems:
        outf = pl.pallas_call(
            _add_kernel,
            out_shape=jax.ShapeDtypeStruct((total,), x.dtype),
            input_output_aliases=io_alias,
            compiler_params=pltpu.CompilerParams(vmem_limit_bytes=vmem_limit),
        )(xf, yf)
    else:
        spec = pl.BlockSpec((block_elems,), lambda i: (i,))
        outf = pl.pallas_call(
            _add_kernel,
            out_shape=jax.ShapeDtypeStruct((total,), x.dtype),
            grid=(pl.cdiv(total, block_elems),),
            in_specs=[spec, spec],
            out_specs=spec,
            input_output_aliases=io_alias,
            compiler_params=pltpu.CompilerParams(
                dimension_semantics=("parallel",),
                vmem_limit_bytes=vmem_limit,
            ),
        )(xf, yf)
    return outf.reshape(orig_shape)


if __name__ == "__main__":
    key = jax.random.PRNGKey(0)
    kx, ky = jax.random.split(key)

    # Small NCHW test shape (single-block, no-grid fast path).
    shape = (2, 4, 16, 16)  # N, C, H, W
    x = jax.random.normal(kx, shape, dtype=jnp.float32)
    y = jax.random.normal(ky, shape, dtype=jnp.float32)
    out = multi_add(x, y)
    jax.block_until_ready(out)
    assert out.shape == shape
    assert jnp.allclose(out, x + y, atol=1e-6, rtol=1e-6)

    # Larger shape to exercise the tiled / double-buffered pipeline path
    # (grid > 1 for every generation's block size, incl. a ragged last block).
    shape2 = (2, 3, 512, 512)
    x2 = jax.random.normal(kx, shape2, dtype=jnp.float32)
    y2 = jax.random.normal(ky, shape2, dtype=jnp.float32)
    out2 = multi_add(x2, y2)
    jax.block_until_ready(out2)
    assert jnp.allclose(out2, x2 + y2, atol=1e-6, rtol=1e-6)

    # Ragged shape (total % 128 != 0) to exercise the copy-free 1-D tail path.
    shape3 = (3, 5, 9)  # 135 elements
    x3 = jax.random.normal(kx, shape3, dtype=jnp.float32)
    y3 = jax.random.normal(ky, shape3, dtype=jnp.float32)
    out3 = multi_add(x3, y3)
    jax.block_until_ready(out3)
    assert jnp.allclose(out3, x3 + y3, atol=1e-6, rtol=1e-6)

    print("KERNEL_OK")
</pallas_src>

<mosaic_0001>
module attributes {stable_mosaic.version = 11 : i64} {
  func.func @_add_kernel(%arg0: memref<16x128xf32, #tpu.memory_space<vmem>>, %arg1: memref<16x128xf32, #tpu.memory_space<vmem>>, %arg2: memref<16x128xf32, #tpu.memory_space<vmem>>) attributes {dimension_semantics = [], scalar_prefetch = 0 : i64, scratch_operands = 0 : i64, tpu.core_type = #tpu.core_type<tc>} {
    %c0 = arith.constant 0 : index
    %c0_0 = arith.constant 0 : index
    %0 = vector.load %arg0[%c0, %c0_0] : memref<16x128xf32, #tpu.memory_space<vmem>>, vector<16x128xf32>
    %c0_1 = arith.constant 0 : index
    %c0_2 = arith.constant 0 : index
    %1 = vector.load %arg1[%c0_1, %c0_2] : memref<16x128xf32, #tpu.memory_space<vmem>>, vector<16x128xf32>
    %2 = arith.addf %0, %1 : vector<16x128xf32>
    %c0_3 = arith.constant 0 : index
    %c0_4 = arith.constant 0 : index
    %3 = vector.load %arg2[%c0_3, %c0_4] : memref<16x128xf32, #tpu.memory_space<vmem>>, vector<16x128xf32>
    tpu.vector_store %arg2[%c0_3, %c0_4], %2 {strides = array<i32>} : memref<16x128xf32, #tpu.memory_space<vmem>>, vector<16x128xf32>,
    return
  }
}

</mosaic_0001>

<bundles_post_ra>
// kernel: multi_add.1
= control target key start
LH: loop header
LB: loop body
LE: loop exit
PB: predicated region body
PF: predicated region fallthrough
CT: control target
= control target key end

     0   :  { %s56_s0 = inlined_call_operand.vmem [shape: f32[16,128], index: 0, kind: input, shape index: {}]   ;;  %s57_s1 = inlined_call_operand.vmem [shape: f32[16,128], index: 1, kind: input, shape index: {}]   ;;  %s58_s2 = inlined_call_operand.vmem [shape: f32[16,128], index: 2, kind: output, shape index: {}]  }
   0x1   :  { %v11_v0 = vld [vmem:[%s56_s0] sm:$0xff]  ;;  %v12_v2 = vld [vmem:[%s56_s0 + $0x8] sm:$0xff] }
   0x2   :  { %v13_v1 = vld [vmem:[%s57_s1] sm:$0xff]  ;;  %v14_v4 = vld [vmem:[%s57_s1 + $0x8] sm:$0xff] }
   0x3   :  { %v15_v3 = vadd.f32 %v13_v1, %v11_v0  ;;  %v16_v5 = vadd.f32 %v14_v4, %v12_v2 }
   0x5   :  { %17 = vst [vmem:[%s58_s2] sm:$0xff] %v15_v3  ;;  %18 = vst [vmem:[%s58_s2 + $0x8] sm:$0xff] %v16_v5 }

</bundles_post_ra>
